<compile_context>
chip_gen: v7x
topology: tpu7x:2x2x1
jax: 0.10.0
libtpu: 0.0.40
codegen_flags: <defaults>
</compile_context>

<pallas_src>
import jax
import jax.numpy as jnp
from jax.experimental import pallas as pl
from jax.experimental.pallas import tpu as pltpu


def _mlp_kernel(x_ref, w1_ref, b1_ref, w2_ref, b2_ref, o_ref):
    # x: (5, TILE_B), w1: (6, 5), b1: (6, 1), w2: (5, 6), b2: (5, 1)
    x = x_ref[...]
    h = jnp.dot(w1_ref[...], x, preferred_element_type=jnp.float32) + b1_ref[...]
    h = jnp.tanh(h)                                   # EUP slot (free under DMA)
    y = jnp.dot(w2_ref[...], h, preferred_element_type=jnp.float32) + b2_ref[...]
    o_ref[...] = y.astype(o_ref.dtype)


def conv1d_da1_forward(x, w1, b1, w2, b2, *, tile_b=65536):
    """x: (B, 5) float32.  w1: (6,5), b1: (6,), w2: (5,6), b2: (5,) (PyTorch layout)."""
    B = x.shape[0]
    in_f = x.shape[1]           # 5
    hid_f = w1.shape[0]         # 6
    out_f = w2.shape[0]         # 5

    # ---- layout plumbing (outside the kernel) -------------------------------
    # batch -> lane axis
    x_t = x.T                                            # (5, B)
    # tile must be a multiple of 128 lanes; cap at tile_b for VMEM headroom
    tb = min(tile_b, pl.next_power_of_2(max(B, 128)))
    n_tiles = pl.cdiv(B, tb)
    b_pad = n_tiles * tb
    if b_pad != B:
        x_t = jnp.pad(x_t, ((0, 0), (0, b_pad - B)))
    # column biases -> lane-broadcast add inside the kernel
    b1_c = b1.reshape(-1, 1)                             # (6, 1)
    b2_c = b2.reshape(-1, 1)                             # (5, 1)

    cost = pl.CostEstimate(
        flops=2 * B * (in_f * hid_f + hid_f * out_f),
        transcendentals=B * hid_f,
        bytes_accessed=4 * (B * in_f + B * out_f
                            + hid_f * in_f + hid_f + out_f * hid_f + out_f),
    )

    out_t = pl.pallas_call(
        _mlp_kernel,
        out_shape=jax.ShapeDtypeStruct((out_f, b_pad), x.dtype),
        grid_spec=pltpu.PrefetchScalarGridSpec(
            num_scalar_prefetch=0,
            grid=(n_tiles,),
            in_specs=[
                pl.BlockSpec((in_f, tb), lambda i: (0, i)),        # x tile (pipelined)
                pl.BlockSpec((hid_f, in_f), lambda i: (0, 0)),     # W1 (resident)
                pl.BlockSpec((hid_f, 1), lambda i: (0, 0)),        # b1 (resident)
                pl.BlockSpec((out_f, hid_f), lambda i: (0, 0)),    # W2 (resident)
                pl.BlockSpec((out_f, 1), lambda i: (0, 0)),        # b2 (resident)
            ],
            out_specs=pl.BlockSpec((out_f, tb), lambda i: (0, i)),
        ),
        compiler_params=pltpu.CompilerParams(
            dimension_semantics=("parallel",),
        ),
        cost_estimate=cost,
    )(x_t, w1, b1_c, w2, b2_c)

    # back to (B, 5), dropping padding
    return out_t[:, :B].T


def init_params(key):
    """Deterministic init mirroring PyTorch nn.Linear defaults:
    U(-1/sqrt(fan_in), 1/sqrt(fan_in)) for both weight and bias."""
    k1, k2, k3, k4 = jax.random.split(key, 4)
    bound1 = 1.0 / jnp.sqrt(5.0)
    bound2 = 1.0 / jnp.sqrt(6.0)
    w1 = jax.random.uniform(k1, (6, 5), jnp.float32, -bound1, bound1)
    b1 = jax.random.uniform(k2, (6,), jnp.float32, -bound1, bound1)
    w2 = jax.random.uniform(k3, (5, 6), jnp.float32, -bound2, bound2)
    b2 = jax.random.uniform(k4, (5,), jnp.float32, -bound2, bound2)
    return w1, b1, w2, b2


def reference_forward(x, w1, b1, w2, b2):
    h = jnp.tanh(x @ w1.T + b1)
    return h @ w2.T + b2


if __name__ == "__main__":
    key = jax.random.PRNGKey(0)
    kx, kp = jax.random.split(key)

    batch = 8
    x = jax.random.normal(kx, (batch, 5), jnp.float32)
    w1, b1, w2, b2 = init_params(kp)

    out = conv1d_da1_forward(x, w1, b1, w2, b2)
    out = jax.block_until_ready(out)

    ref = reference_forward(x, w1, b1, w2, b2)
    assert out.shape == (batch, 5)
    assert jnp.allclose(out, ref, atol=1e-5, rtol=1e-5)

    print("KERNEL_OK")
</pallas_src>

<mosaic_0001>
module attributes {stable_mosaic.version = 11 : i64} {
  func.func @_mlp_kernel(%arg0: i32, %arg1: memref<5x128xf32, #tpu.memory_space<vmem>>, %arg2: memref<6x5xf32, #tpu.memory_space<vmem>>, %arg3: memref<6x1xf32, #tpu.memory_space<vmem>>, %arg4: memref<5x6xf32, #tpu.memory_space<vmem>>, %arg5: memref<5x1xf32, #tpu.memory_space<vmem>>, %arg6: memref<5x128xf32, #tpu.memory_space<vmem>>) attributes {dimension_semantics = [#tpu.dimension_semantics<parallel>], iteration_bounds = array<i64: 1>, scalar_prefetch = 0 : i64, scratch_operands = 0 : i64, tpu.core_type = #tpu.core_type<tc>, window_params = [{transform_indices = @transform_0, window_bounds = array<i64: 5, 128>}, {pipeline_mode = #tpu.pipeline_mode<synchronous>, transform_indices = @transform_1, window_bounds = array<i64: 6, 5>}, {pipeline_mode = #tpu.pipeline_mode<synchronous>, transform_indices = @transform_2, window_bounds = array<i64: 6, 1>}, {pipeline_mode = #tpu.pipeline_mode<synchronous>, transform_indices = @transform_3, window_bounds = array<i64: 5, 6>}, {pipeline_mode = #tpu.pipeline_mode<synchronous>, transform_indices = @transform_4, window_bounds = array<i64: 5, 1>}, {transform_indices = @transform_5, window_bounds = array<i64: 5, 128>}]} {
    %c0 = arith.constant 0 : index
    %c0_0 = arith.constant 0 : index
    %0 = vector.load %arg1[%c0, %c0_0] : memref<5x128xf32, #tpu.memory_space<vmem>>, vector<5x128xf32>
    %c0_1 = arith.constant 0 : index
    %c0_2 = arith.constant 0 : index
    %1 = vector.load %arg2[%c0_1, %c0_2] : memref<6x5xf32, #tpu.memory_space<vmem>>, vector<6x5xf32>
    %cst = arith.constant dense<0.000000e+00> : vector<6x128xf32>
    %2 = tpu.matmul %1, %0, %cst {dimension_numbers = #tpu.dot_dimension_numbers<[1], [0], [0], [1], [0, 0, 1, 1], [], []>} : vector<6x5xf32>, vector<5x128xf32>, vector<6x128xf32> -> vector<6x128xf32>
    %c0_3 = arith.constant 0 : index
    %c0_4 = arith.constant 0 : index
    %3 = vector.load %arg3[%c0_3, %c0_4] : memref<6x1xf32, #tpu.memory_space<vmem>>, vector<6x1xf32>
    %4 = vector.broadcast %3 : vector<6x1xf32> to vector<6x128xf32>
    %5 = arith.addf %2, %4 : vector<6x128xf32>
    %6 = math.tanh %5 : vector<6x128xf32>
    %c0_5 = arith.constant 0 : index
    %c0_6 = arith.constant 0 : index
    %7 = vector.load %arg4[%c0_5, %c0_6] : memref<5x6xf32, #tpu.memory_space<vmem>>, vector<5x6xf32>
    %cst_7 = arith.constant dense<0.000000e+00> : vector<5x128xf32>
    %8 = tpu.matmul %7, %6, %cst_7 {dimension_numbers = #tpu.dot_dimension_numbers<[1], [0], [0], [1], [0, 0, 1, 1], [], []>} : vector<5x6xf32>, vector<6x128xf32>, vector<5x128xf32> -> vector<5x128xf32>
    %c0_8 = arith.constant 0 : index
    %c0_9 = arith.constant 0 : index
    %9 = vector.load %arg5[%c0_8, %c0_9] : memref<5x1xf32, #tpu.memory_space<vmem>>, vector<5x1xf32>
    %10 = vector.broadcast %9 : vector<5x1xf32> to vector<5x128xf32>
    %11 = arith.addf %8, %10 : vector<5x128xf32>
    %c0_10 = arith.constant 0 : index
    %c0_11 = arith.constant 0 : index
    %12 = vector.load %arg6[%c0_10, %c0_11] : memref<5x128xf32, #tpu.memory_space<vmem>>, vector<5x128xf32>
    tpu.vector_store %arg6[%c0_10, %c0_11], %11 {strides = array<i32>} : memref<5x128xf32, #tpu.memory_space<vmem>>, vector<5x128xf32>,
    return
  }
  func.func @transform_0(%arg0: i32) -> (i32, i32) {
    %c0_i32 = arith.constant 0 : i32
    %c0_i32_0 = arith.constant 0 : i32
    return %c0_i32, %arg0 : i32, i32
  }
  func.func @transform_1(%arg0: i32) -> (i32, i32) {
    %c0_i32 = arith.constant 0 : i32
    %c0_i32_0 = arith.constant 0 : i32
    %c0_i32_1 = arith.constant 0 : i32
    return %c0_i32, %c0_i32_0 : i32, i32
  }
  func.func @transform_2(%arg0: i32) -> (i32, i32) {
    %c0_i32 = arith.constant 0 : i32
    %c0_i32_0 = arith.constant 0 : i32
    %c0_i32_1 = arith.constant 0 : i32
    return %c0_i32, %c0_i32_0 : i32, i32
  }
  func.func @transform_3(%arg0: i32) -> (i32, i32) {
    %c0_i32 = arith.constant 0 : i32
    %c0_i32_0 = arith.constant 0 : i32
    %c0_i32_1 = arith.constant 0 : i32
    return %c0_i32, %c0_i32_0 : i32, i32
  }
  func.func @transform_4(%arg0: i32) -> (i32, i32) {
    %c0_i32 = arith.constant 0 : i32
    %c0_i32_0 = arith.constant 0 : i32
    %c0_i32_1 = arith.constant 0 : i32
    return %c0_i32, %c0_i32_0 : i32, i32
  }
  func.func @transform_5(%arg0: i32) -> (i32, i32) {
    %c0_i32 = arith.constant 0 : i32
    %c0_i32_0 = arith.constant 0 : i32
    return %c0_i32, %arg0 : i32, i32
  }
}

</mosaic_0001>

<bundles_post_ra>
// kernel: tpu_custom_call.1
= control target key start
LH: loop header
LB: loop body
LE: loop exit
PB: predicated region body
PF: predicated region fallthrough
CT: control target
= control target key end

     0   :  { %vm33_vm0 = vcmask 1044480   ;;  %vm29_vm1 = vcmask 39936   ;;  %v257_v1 = vmov 0.0   ;;  %vm258_vm2 = vmmov 0   ;;  %s318_s0 = inlined_call_operand.vmem [shape: f32[5,128], index: 0, kind: input, shape index: {}]   ;;  %s319_s1 = inlined_call_operand.vmem [shape: f32[6,5], index: 1, kind: input, shape index: {}]   ;;  %s320_s2 = inlined_call_operand.vmem [shape: f32[6,1], index: 2, kind: input, shape index: {}]   ;;  %s321_s3 = inlined_call_operand.vmem [shape: f32[5,6], index: 3, kind: input, shape index: {}]   ;;  %s322_s4 = inlined_call_operand.vmem [shape: f32[5,1], index: 4, kind: input, shape index: {}]   ;;  %s323_s5 = inlined_call_operand.hbm [shape: f32[5,128], index: 5, kind: output, shape index: {}]  }
   0x1   :  { %v21_v0 = vld [vmem:[%s318_s0] sm:$0x1f]  ;;  %216 = vmatprep.subr.mxu0 %v257_v1  ;;  %218 = vmatprep.mubr.msk.f32.mxu0 %vm258_vm2, %v257_v1  ;;  %v259_v4 = vmov 0  }
   0x2   :  { %v22_v2 = vld [vmem:[%s319_s1] sm:$0x3f]  ;;  %217 = vmatpush3.msk.msra.mxu0 %vm33_vm0, %v21_v0  ;;  %230 = vset.pattern.permute.xlu0 %v259_v4 }
   0x3   :  { %v23_v3 = vld [vmem:[%s320_s2] sm:$0x3f] }
   0x4   :  { %10 = vsyncpa [#allocation3], 0  ;;  %219 = vmatmul.mubr.msk.f32.vlgmr.msra.gmra.mrb[0].mxu0 %vm29_vm1, %v22_v2  ;;  %26 = vperm.xlu0 %230, %v23_v3   ;;  %v109_v5 = vld [vmem:[%s322_s4] sm:$0x1f]  ;;  %vm119_vm3 = vcmask 1045504   ;;  %vm115_vm4 = vcmask 48128  }
   0x5   :  { %221 = vmatprep.subr.mxu1 %v257_v1  ;;  %223 = vmatprep.mubr.msk.f32.mxu1 %vm258_vm2, %v257_v1  ;;  %v108_v10 = vld [vmem:[%s321_s3] sm:$0x1f]  ;;  %s260_s25 = smov [#allocation2]  }
   0x6   :  { %s200_s26 = sshll.u32 %s260_s25, 4  ;;  %s201_s26 = int_to_ptr.vmem [resolvable:$true] %s200_s26 }
   0x7   :  { %s233_s4 = scalar_lea.vmem %s201_s26, 128  ;;  %p238_p1 = scmp.lt.s32.totalorder %s201_s26, %s201_s26 }
   0x8   :  { %112 = vperm.xlu0 %230, %v109_v5   ;;  %p234_p0 = scmp.ne.s32.totalorder %s201_s26, %s233_s4  ;;  %p239_p2 = scmp.lt.s32.totalorder %s233_s4, %s233_s4 }
   0xa   :  { %p240_p3 = por %p239_p2, %p238_p1 }
   0xc   :  { %p241_p4 = pnand %p240_p3, %p234_p0 }
  0x83   :  { %v27_v6 = vpop.permute.xlu0 %26 }
  0x87   :  { %v113_v12 = vpop.permute.xlu0 %112 }
  0xd7   :  { %v103_v7 = vpop.f32.mrb[0].mxu0 }
  0xd8   :  { %v104_v8 = vadd.f32 %v103_v7, %v27_v6  ;;  %v220_v9 = vpop.f32.mrb[1].mxu0 }
  0xda   :  { %231 = vtanh.f32 %v104_v8 }
  0xe4   :  { %v232_v11 = vpop.eup %231 }
  0xe5   :  { %222 = vmatpush3.msk.msra.mxu1 %vm119_vm3, %v232_v11 }
  0xe6   :  { %224 = vmatmul.mubr.msk.f32.vlgmr.msra.gmra.mrb[0].mxu1 %vm115_vm4, %v108_v10 }
 0x1b9   :  { %v189_v13 = vpop.f32.mrb[0].mxu1 }
 0x1ba   :  { %v190_v14 = vadd.f32 %v189_v13, %v113_v12  ;;  %v225_v15 = vpop.f32.mrb[1].mxu1 }
 0x1bc   :  { %193 = vst [vmem:[#allocation2] sm:$0x1f] %v190_v14 }
 0x1bd   :  { %244 = shalt.err (!%p241_p4)
}
 0x1be   :  { %s245_s28 = scalar_lea.hbm %s323_s5, 128 }
 0x1bf   :  { %p246_p5 = scmp.ne.s32.totalorder %s323_s5, %s245_s28  ;;  %p249_p6 = scmp.lt.u32.totalorder %s245_s28, %s323_s5 }
 0x1c1   :  { %p251_p7 = pnand %p249_p6, %p246_p5 }
 0x1c3   :  { %254 = shalt.err (!%p251_p7)
}
 0x1c4   :  { %203 = dma.vmem_to_hbm [thread:$0]  %s201_s26, 128, %s323_s5, [#allocation3]  }
 0x1c5   :  { %255 = dma.done.wait [#allocation3], 128  }
 0x1c6   :  { %256 = vsyncadd [#allocation3], 4294967168 }
 0x1c7   :  { %207 = vsyncpa [#allocation3], 1 }

</bundles_post_ra>
